<compile_context>
chip_gen: v5e
topology: v5e:2x2
jax: 0.10.0
libtpu: 0.0.40
codegen_flags: <defaults>
</compile_context>

<pallas_src>
import jax
import jax.numpy as jnp
from jax.experimental import pallas as pl
from jax.experimental.pallas import tpu as pltpu


def attention_kernel(ids_ref, len_ref, vlogit_ref, tbl_ref, w_comb_ref,
                     b_comb_ref, out_ref):
    ids = ids_ref[...]                                   # (TB, S) int32
    TB, S = ids.shape
    lens = len_ref[...]                                  # (TB, 1) int32
    vlogit = vlogit_ref[...]                             # (1, Vp) f32
    Vp = vlogit.shape[-1]

    # --- Token-count matrix C[b, v] = #{valid s : ids[b, s] == v} ----------
    # One pass over S; each step is a (TB, Vp) VPU compare + add.  No
    # (TB, S, V) one-hot and no (TB, S, E) gathered-embedding intermediate.
    iota_v = jax.lax.broadcasted_iota(jnp.int32, (1, Vp), 1)   # hoisted
    cnt = jnp.zeros((TB, Vp), jnp.float32)
    for s in range(S):                                    # S is small & static
        eq = iota_v == ids[:, s:s + 1]                    # (TB, Vp) bool
        valid = s < lens                                  # (TB, 1) bool
        cnt = cnt + (eq & valid).astype(jnp.float32)

    present = cnt > 0.0                                   # (TB, Vp)

    # --- Grouped (per-vocab) masked softmax ---------------------------------
    # Identical to per-position softmax->mask->renorm since the logit depends
    # only on the token id (duplicate tokens just scale by their count).
    m = jnp.max(jnp.where(present, vlogit, -jnp.inf), axis=1, keepdims=True)
    p = jnp.where(present, cnt * jnp.exp(vlogit - m), 0.0)        # (TB, Vp)
    denom = jnp.sum(p, axis=1, keepdims=True)                     # (TB, 1)
    weights = p * (1.0 / denom)            # exact divide (cheap per-row column)

    # --- Attention pooling as ONE MXU matmul --------------------------------
    atten = jnp.dot(weights, tbl_ref[...],
                    preferred_element_type=jnp.float32)           # (TB, E)

    # --- Folded hidden+out linear (no activation between them) --------------
    out_ref[...] = (jnp.dot(atten, w_comb_ref[...],
                            preferred_element_type=jnp.float32)
                    + b_comb_ref[...]).astype(out_ref.dtype)


def attention_forward(inputs, lengths, embedding, w_attn, w_hidden, b_hidden,
                      w_out, b_out, *, block_b=512):
    """inputs: (B, S) int32 token ids; lengths: (B,) int32.

    w_attn:(E,1)  w_hidden:(E,H)  b_hidden:(H,)  w_out:(H,C)  b_out:(C,)
    (transposes of the corresponding nn.Linear weights).
    """
    B, S = inputs.shape
    V, E = embedding.shape
    H = w_hidden.shape[1]
    C = w_out.shape[1]

    # Fold the two bias-linear layers (no activation in between -> exact).
    w_comb = (w_hidden @ w_out).astype(jnp.float32)                     # (E, C)
    b_comb = (b_hidden.reshape(1, H) @ w_out
              + b_out.reshape(1, C)).astype(jnp.float32)                # (1, C)

    # Lane-pad output width to 128 so the final store is an unmasked vst.
    c_pad = ((C + 127) // 128) * 128
    w_comb = jnp.pad(w_comb, ((0, 0), (0, c_pad - C)))
    b_comb = jnp.pad(b_comb, ((0, 0), (0, c_pad - C)))

    # Per-vocab logit folded at trace time: l_v = table[v] . w_attn.
    v_pad = ((V + 127) // 128) * 128
    v_logit = (embedding.astype(jnp.float32)
               @ w_attn.astype(jnp.float32)).reshape(1, V)
    v_logit = jnp.pad(v_logit, ((0, 0), (0, v_pad - V)))                # (1,Vp)
    table = jnp.pad(embedding.astype(jnp.float32),
                    ((0, v_pad - V), (0, 0)))                           # (Vp,E)

    lengths2d = lengths.reshape(B, 1).astype(jnp.int32)

    # Batch tile: keep tiles 8-sublane aligned and, when possible, give the
    # grid >= 2 steps so the "parallel" axis can be split across the two
    # TensorCores of a v7x chip.
    if B <= 8:
        tb = B
    else:
        tb = min(block_b, ((pl.cdiv(B, 2) + 7) // 8) * 8)
    grid = (pl.cdiv(B, tb),)

    def _build(single_buffer_weights):
        res_kwargs = ({"pipeline_mode": pl.Buffered(1)}
                      if single_buffer_weights else {})

        def resident(shape):
            # Grid-invariant operand: constant index_map (stays VMEM-resident
            # across the grid); single-buffered to halve its VMEM cost.
            return pl.BlockSpec(shape, lambda i: (0, 0), **res_kwargs)

        return pl.pallas_call(
            attention_kernel,
            out_shape=jax.ShapeDtypeStruct((B, c_pad), jnp.float32),
            grid=grid,
            in_specs=[
                pl.BlockSpec((tb, S), lambda i: (i, 0)),   # token ids
                pl.BlockSpec((tb, 1), lambda i: (i, 0)),   # lengths
                resident((1, v_pad)),                      # per-vocab logits
                resident((v_pad, E)),                      # embedding table
                resident((E, c_pad)),                      # folded W_hidden@W_out
                resident((1, c_pad)),                      # folded bias
            ],
            out_specs=pl.BlockSpec((tb, c_pad), lambda i: (i, 0)),
            compiler_params=pltpu.CompilerParams(
                dimension_semantics=("parallel",),          # megacore batch split
                vmem_limit_bytes=32 * 1024 * 1024),         # safe on v5e/v6e/v7x
        )

    args = (inputs.astype(jnp.int32), lengths2d, v_logit, table, w_comb, b_comb)
    try:
        out_padded = jax.block_until_ready(_build(True)(*args))
    except Exception:
        # Fallback if this jax build rejects pipeline_mode on pallas_call
        # BlockSpecs: default double-buffering (VMEM-footprint only).
        out_padded = _build(False)(*args)

    return out_padded[:, :C]


def reference_forward(inputs, lengths, embedding, w_attn, w_hidden, b_hidden,
                      w_out, b_out):
    """Plain-JAX mirror of the PyTorch module (unfused, softmax->mask->renorm)."""
    emb = jnp.take(embedding, inputs, axis=0)             # (B, S, E)
    B, S, E = emb.shape
    logits = (emb.reshape(B * S, E) @ w_attn).reshape(B, S)
    alphas = jax.nn.softmax(logits, axis=1)
    mask = (jnp.arange(S)[None, :] < lengths[:, None]).astype(jnp.float32)
    alphas = alphas * mask
    alphas = alphas / jnp.sum(alphas, axis=1, keepdims=True)
    atten = jnp.einsum('bs,bse->be', alphas, emb)
    hidden = atten @ w_hidden + b_hidden
    return hidden @ w_out + b_out


if __name__ == "__main__":
    B, S, E, H, C, V = 2, 8, 32, 32, 4, 50

    key = jax.random.PRNGKey(0)
    ks = jax.random.split(key, 8)

    embedding = jax.random.normal(ks[0], (V, E), dtype=jnp.float32) * 0.1
    w_attn = jax.random.normal(ks[1], (E, 1), dtype=jnp.float32) * 0.1
    w_hidden = jax.random.normal(ks[2], (E, H), dtype=jnp.float32) * 0.1
    b_hidden = jax.random.normal(ks[3], (H,), dtype=jnp.float32) * 0.1
    w_out = jax.random.normal(ks[4], (H, C), dtype=jnp.float32) * 0.1
    b_out = jax.random.normal(ks[5], (C,), dtype=jnp.float32) * 0.1

    inputs = jax.random.randint(ks[6], (B, S), 0, V, dtype=jnp.int32)
    lengths = jnp.array([8, 5], dtype=jnp.int32)

    out = attention_forward(inputs, lengths, embedding, w_attn, w_hidden,
                            b_hidden, w_out, b_out)
    out = jax.block_until_ready(out)

    ref = reference_forward(inputs, lengths, embedding, w_attn, w_hidden,
                            b_hidden, w_out, b_out)
    assert out.shape == (B, C)
    assert jnp.allclose(out, ref, atol=1e-4, rtol=1e-3), (
        f"max abs err {jnp.max(jnp.abs(out - ref))}")

    # Also exercise the multi-block ("parallel" grid) path with a small batch.
    B2 = 16
    inputs2 = jax.random.randint(ks[7], (B2, S), 0, V, dtype=jnp.int32)
    lengths2 = jax.random.randint(jax.random.PRNGKey(1), (B2,), 1, S + 1,
                                  dtype=jnp.int32)
    out2 = jax.block_until_ready(
        attention_forward(inputs2, lengths2, embedding, w_attn, w_hidden,
                          b_hidden, w_out, b_out))
    ref2 = reference_forward(inputs2, lengths2, embedding, w_attn, w_hidden,
                             b_hidden, w_out, b_out)
    assert jnp.allclose(out2, ref2, atol=1e-4, rtol=1e-3), (
        f"max abs err {jnp.max(jnp.abs(out2 - ref2))}")

    print("KERNEL_OK")
</pallas_src>

<mosaic_0001>
module attributes {stable_mosaic.version = 11 : i64} {
  func.func @attention_kernel(%arg0: i32, %arg1: memref<2x8xi32, #tpu.memory_space<vmem>>, %arg2: memref<2x1xi32, #tpu.memory_space<vmem>>, %arg3: memref<1x128xf32, #tpu.memory_space<vmem>>, %arg4: memref<128x32xf32, #tpu.memory_space<vmem>>, %arg5: memref<32x128xf32, #tpu.memory_space<vmem>>, %arg6: memref<1x128xf32, #tpu.memory_space<vmem>>, %arg7: memref<2x128xf32, #tpu.memory_space<vmem>>) attributes {dimension_semantics = [#tpu.dimension_semantics<parallel>], iteration_bounds = array<i64: 1>, scalar_prefetch = 0 : i64, scratch_operands = 0 : i64, tpu.core_type = #tpu.core_type<tc>, window_params = [{transform_indices = @transform_0, window_bounds = array<i64: 2, 8>}, {transform_indices = @transform_1, window_bounds = array<i64: 2, 1>}, {pipeline_mode = #tpu.pipeline_mode<synchronous>, transform_indices = @transform_2, window_bounds = array<i64: 1, 128>}, {pipeline_mode = #tpu.pipeline_mode<synchronous>, transform_indices = @transform_3, window_bounds = array<i64: 128, 32>}, {pipeline_mode = #tpu.pipeline_mode<synchronous>, transform_indices = @transform_4, window_bounds = array<i64: 32, 128>}, {pipeline_mode = #tpu.pipeline_mode<synchronous>, transform_indices = @transform_5, window_bounds = array<i64: 1, 128>}, {transform_indices = @transform_6, window_bounds = array<i64: 2, 128>}]} {
    %c0 = arith.constant 0 : index
    %c0_0 = arith.constant 0 : index
    %0 = vector.load %arg1[%c0, %c0_0] : memref<2x8xi32, #tpu.memory_space<vmem>>, vector<2x8xi32>
    %c0_1 = arith.constant 0 : index
    %c0_2 = arith.constant 0 : index
    %1 = vector.load %arg2[%c0_1, %c0_2] : memref<2x1xi32, #tpu.memory_space<vmem>>, vector<2x1xi32>
    %c0_3 = arith.constant 0 : index
    %c0_4 = arith.constant 0 : index
    %2 = vector.load %arg3[%c0_3, %c0_4] : memref<1x128xf32, #tpu.memory_space<vmem>>, vector<1x128xf32>
    %3 = tpu.iota {dimensions = array<i32: 1>} : vector<1x128xi32>
    %cst = arith.constant 0.000000e+00 : f32
    %4 = vector.broadcast %cst : f32 to vector<2x128xf32>
    %5 = vector.extract_strided_slice %0 {offsets = [0, 0], sizes = [2, 1], strides = [1, 1]} : vector<2x8xi32> to vector<2x1xi32>
    %6 = vector.broadcast %3 : vector<1x128xi32> to vector<2x128xi32>
    %7 = vector.broadcast %5 : vector<2x1xi32> to vector<2x128xi32>
    %8 = arith.cmpi eq, %6, %7 : vector<2x128xi32>
    %c0_i32 = arith.constant 0 : i32
    %9 = vector.broadcast %c0_i32 : i32 to vector<2x1xi32>
    %10 = arith.cmpi sgt, %1, %9 : vector<2x1xi32>
    %11 = vector.broadcast %10 : vector<2x1xi1> to vector<2x128xi1>
    %12 = arith.andi %8, %11 : vector<2x128xi1>
    %13 = arith.extui %12 : vector<2x128xi1> to vector<2x128xi32>
    %14 = arith.sitofp %13 : vector<2x128xi32> to vector<2x128xf32>
    %15 = arith.addf %4, %14 : vector<2x128xf32>
    %16 = vector.extract_strided_slice %0 {offsets = [0, 1], sizes = [2, 1], strides = [1, 1]} : vector<2x8xi32> to vector<2x1xi32>
    %17 = vector.broadcast %3 : vector<1x128xi32> to vector<2x128xi32>
    %18 = vector.broadcast %16 : vector<2x1xi32> to vector<2x128xi32>
    %19 = arith.cmpi eq, %17, %18 : vector<2x128xi32>
    %c1_i32 = arith.constant 1 : i32
    %20 = vector.broadcast %c1_i32 : i32 to vector<2x1xi32>
    %21 = arith.cmpi sgt, %1, %20 : vector<2x1xi32>
    %22 = vector.broadcast %21 : vector<2x1xi1> to vector<2x128xi1>
    %23 = arith.andi %19, %22 : vector<2x128xi1>
    %24 = arith.extui %23 : vector<2x128xi1> to vector<2x128xi32>
    %25 = arith.sitofp %24 : vector<2x128xi32> to vector<2x128xf32>
    %26 = arith.addf %15, %25 : vector<2x128xf32>
    %27 = vector.extract_strided_slice %0 {offsets = [0, 2], sizes = [2, 1], strides = [1, 1]} : vector<2x8xi32> to vector<2x1xi32>
    %28 = vector.broadcast %3 : vector<1x128xi32> to vector<2x128xi32>
    %29 = vector.broadcast %27 : vector<2x1xi32> to vector<2x128xi32>
    %30 = arith.cmpi eq, %28, %29 : vector<2x128xi32>
    %c2_i32 = arith.constant 2 : i32
    %31 = vector.broadcast %c2_i32 : i32 to vector<2x1xi32>
    %32 = arith.cmpi sgt, %1, %31 : vector<2x1xi32>
    %33 = vector.broadcast %32 : vector<2x1xi1> to vector<2x128xi1>
    %34 = arith.andi %30, %33 : vector<2x128xi1>
    %35 = arith.extui %34 : vector<2x128xi1> to vector<2x128xi32>
    %36 = arith.sitofp %35 : vector<2x128xi32> to vector<2x128xf32>
    %37 = arith.addf %26, %36 : vector<2x128xf32>
    %38 = vector.extract_strided_slice %0 {offsets = [0, 3], sizes = [2, 1], strides = [1, 1]} : vector<2x8xi32> to vector<2x1xi32>
    %39 = vector.broadcast %3 : vector<1x128xi32> to vector<2x128xi32>
    %40 = vector.broadcast %38 : vector<2x1xi32> to vector<2x128xi32>
    %41 = arith.cmpi eq, %39, %40 : vector<2x128xi32>
    %c3_i32 = arith.constant 3 : i32
    %42 = vector.broadcast %c3_i32 : i32 to vector<2x1xi32>
    %43 = arith.cmpi sgt, %1, %42 : vector<2x1xi32>
    %44 = vector.broadcast %43 : vector<2x1xi1> to vector<2x128xi1>
    %45 = arith.andi %41, %44 : vector<2x128xi1>
    %46 = arith.extui %45 : vector<2x128xi1> to vector<2x128xi32>
    %47 = arith.sitofp %46 : vector<2x128xi32> to vector<2x128xf32>
    %48 = arith.addf %37, %47 : vector<2x128xf32>
    %49 = vector.extract_strided_slice %0 {offsets = [0, 4], sizes = [2, 1], strides = [1, 1]} : vector<2x8xi32> to vector<2x1xi32>
    %50 = vector.broadcast %3 : vector<1x128xi32> to vector<2x128xi32>
    %51 = vector.broadcast %49 : vector<2x1xi32> to vector<2x128xi32>
    %52 = arith.cmpi eq, %50, %51 : vector<2x128xi32>
    %c4_i32 = arith.constant 4 : i32
    %53 = vector.broadcast %c4_i32 : i32 to vector<2x1xi32>
    %54 = arith.cmpi sgt, %1, %53 : vector<2x1xi32>
    %55 = vector.broadcast %54 : vector<2x1xi1> to vector<2x128xi1>
    %56 = arith.andi %52, %55 : vector<2x128xi1>
    %57 = arith.extui %56 : vector<2x128xi1> to vector<2x128xi32>
    %58 = arith.sitofp %57 : vector<2x128xi32> to vector<2x128xf32>
    %59 = arith.addf %48, %58 : vector<2x128xf32>
    %60 = vector.extract_strided_slice %0 {offsets = [0, 5], sizes = [2, 1], strides = [1, 1]} : vector<2x8xi32> to vector<2x1xi32>
    %61 = vector.broadcast %3 : vector<1x128xi32> to vector<2x128xi32>
    %62 = vector.broadcast %60 : vector<2x1xi32> to vector<2x128xi32>
    %63 = arith.cmpi eq, %61, %62 : vector<2x128xi32>
    %c5_i32 = arith.constant 5 : i32
    %64 = vector.broadcast %c5_i32 : i32 to vector<2x1xi32>
    %65 = arith.cmpi sgt, %1, %64 : vector<2x1xi32>
    %66 = vector.broadcast %65 : vector<2x1xi1> to vector<2x128xi1>
    %67 = arith.andi %63, %66 : vector<2x128xi1>
    %68 = arith.extui %67 : vector<2x128xi1> to vector<2x128xi32>
    %69 = arith.sitofp %68 : vector<2x128xi32> to vector<2x128xf32>
    %70 = arith.addf %59, %69 : vector<2x128xf32>
    %71 = vector.extract_strided_slice %0 {offsets = [0, 6], sizes = [2, 1], strides = [1, 1]} : vector<2x8xi32> to vector<2x1xi32>
    %72 = vector.broadcast %3 : vector<1x128xi32> to vector<2x128xi32>
    %73 = vector.broadcast %71 : vector<2x1xi32> to vector<2x128xi32>
    %74 = arith.cmpi eq, %72, %73 : vector<2x128xi32>
    %c6_i32 = arith.constant 6 : i32
    %75 = vector.broadcast %c6_i32 : i32 to vector<2x1xi32>
    %76 = arith.cmpi sgt, %1, %75 : vector<2x1xi32>
    %77 = vector.broadcast %76 : vector<2x1xi1> to vector<2x128xi1>
    %78 = arith.andi %74, %77 : vector<2x128xi1>
    %79 = arith.extui %78 : vector<2x128xi1> to vector<2x128xi32>
    %80 = arith.sitofp %79 : vector<2x128xi32> to vector<2x128xf32>
    %81 = arith.addf %70, %80 : vector<2x128xf32>
    %82 = vector.extract_strided_slice %0 {offsets = [0, 7], sizes = [2, 1], strides = [1, 1]} : vector<2x8xi32> to vector<2x1xi32>
    %83 = vector.broadcast %3 : vector<1x128xi32> to vector<2x128xi32>
    %84 = vector.broadcast %82 : vector<2x1xi32> to vector<2x128xi32>
    %85 = arith.cmpi eq, %83, %84 : vector<2x128xi32>
    %c7_i32 = arith.constant 7 : i32
    %86 = vector.broadcast %c7_i32 : i32 to vector<2x1xi32>
    %87 = arith.cmpi sgt, %1, %86 : vector<2x1xi32>
    %88 = vector.broadcast %87 : vector<2x1xi1> to vector<2x128xi1>
    %89 = arith.andi %85, %88 : vector<2x128xi1>
    %90 = arith.extui %89 : vector<2x128xi1> to vector<2x128xi32>
    %91 = arith.sitofp %90 : vector<2x128xi32> to vector<2x128xf32>
    %92 = arith.addf %81, %91 : vector<2x128xf32>
    %cst_5 = arith.constant 0.000000e+00 : f32
    %93 = vector.broadcast %cst_5 : f32 to vector<2x128xf32>
    %94 = arith.cmpf ogt, %92, %93 : vector<2x128xf32>
    %cst_6 = arith.constant 0xFF800000 : f32
    %95 = vector.shape_cast %2 : vector<1x128xf32> to vector<1x128xf32>
    %96 = vector.broadcast %95 : vector<1x128xf32> to vector<2x128xf32>
    %97 = vector.broadcast %cst_6 : f32 to vector<2x128xf32>
    %98 = arith.select %94, %96, %97 : vector<2x128xi1>, vector<2x128xf32>
    %cst_7 = arith.constant dense<0xFF800000> : vector<2xf32>
    %99 = vector.multi_reduction <maximumf>, %98, %cst_7 [1] : vector<2x128xf32> to vector<2xf32>
    %100 = vector.shape_cast %99 : vector<2xf32> to vector<2x1xf32>
    %101 = vector.broadcast %2 : vector<1x128xf32> to vector<2x128xf32>
    %102 = vector.broadcast %100 : vector<2x1xf32> to vector<2x128xf32>
    %103 = arith.subf %101, %102 : vector<2x128xf32>
    %104 = math.exp %103 : vector<2x128xf32>
    %105 = arith.mulf %92, %104 : vector<2x128xf32>
    %cst_8 = arith.constant 0.000000e+00 : f32
    %106 = vector.broadcast %cst_8 : f32 to vector<2x128xf32>
    %107 = arith.select %94, %105, %106 : vector<2x128xi1>, vector<2x128xf32>
    %cst_9 = arith.constant dense<0.000000e+00> : vector<2xf32>
    %108 = vector.multi_reduction <add>, %107, %cst_9 [1] : vector<2x128xf32> to vector<2xf32>
    %109 = vector.shape_cast %108 : vector<2xf32> to vector<2x1xf32>
    %cst_10 = arith.constant 1.000000e+00 : f32
    %110 = vector.broadcast %cst_10 : f32 to vector<2x1xf32>
    %111 = arith.divf %110, %109 : vector<2x1xf32>
    %112 = vector.broadcast %111 : vector<2x1xf32> to vector<2x128xf32>
    %113 = arith.mulf %107, %112 : vector<2x128xf32>
    %c0_11 = arith.constant 0 : index
    %c0_12 = arith.constant 0 : index
    %114 = vector.load %arg4[%c0_11, %c0_12] : memref<128x32xf32, #tpu.memory_space<vmem>>, vector<128x32xf32>
    %cst_13 = arith.constant dense<0.000000e+00> : vector<2x32xf32>
    %115 = tpu.matmul %113, %114, %cst_13 {dimension_numbers = #tpu.dot_dimension_numbers<[1], [0], [0], [1], [0, 0, 1, 1], [], []>} : vector<2x128xf32>, vector<128x32xf32>, vector<2x32xf32> -> vector<2x32xf32>
    %c0_14 = arith.constant 0 : index
    %c0_15 = arith.constant 0 : index
    %116 = vector.load %arg5[%c0_14, %c0_15] : memref<32x128xf32, #tpu.memory_space<vmem>>, vector<32x128xf32>
    %cst_16 = arith.constant dense<0.000000e+00> : vector<2x128xf32>
    %117 = tpu.matmul %115, %116, %cst_16 {dimension_numbers = #tpu.dot_dimension_numbers<[1], [0], [0], [1], [0, 0, 1, 1], [], []>} : vector<2x32xf32>, vector<32x128xf32>, vector<2x128xf32> -> vector<2x128xf32>
    %c0_17 = arith.constant 0 : index
    %c0_18 = arith.constant 0 : index
    %118 = vector.load %arg6[%c0_17, %c0_18] : memref<1x128xf32, #tpu.memory_space<vmem>>, vector<1x128xf32>
    %119 = vector.broadcast %118 : vector<1x128xf32> to vector<2x128xf32>
    %120 = arith.addf %117, %119 : vector<2x128xf32>
    %c0_19 = arith.constant 0 : index
    %c0_20 = arith.constant 0 : index
    %121 = vector.load %arg7[%c0_19, %c0_20] : memref<2x128xf32, #tpu.memory_space<vmem>>, vector<2x128xf32>
    tpu.vector_store %arg7[%c0_19, %c0_20], %120 {strides = array<i32>} : memref<2x128xf32, #tpu.memory_space<vmem>>, vector<2x128xf32>,
    return
  }
  func.func @transform_0(%arg0: i32) -> (i32, i32) {
    %c0_i32 = arith.constant 0 : i32
    %c0_i32_0 = arith.constant 0 : i32
    return %arg0, %c0_i32 : i32, i32
  }
  func.func @transform_1(%arg0: i32) -> (i32, i32) {
    %c0_i32 = arith.constant 0 : i32
    %c0_i32_0 = arith.constant 0 : i32
    return %arg0, %c0_i32 : i32, i32
  }
  func.func @transform_2(%arg0: i32) -> (i32, i32) {
    %c0_i32 = arith.constant 0 : i32
    %c0_i32_0 = arith.constant 0 : i32
    %c0_i32_1 = arith.constant 0 : i32
    return %c0_i32, %c0_i32_0 : i32, i32
  }
  func.func @transform_3(%arg0: i32) -> (i32, i32) {
    %c0_i32 = arith.constant 0 : i32
    %c0_i32_0 = arith.constant 0 : i32
    %c0_i32_1 = arith.constant 0 : i32
    return %c0_i32, %c0_i32_0 : i32, i32
  }
  func.func @transform_4(%arg0: i32) -> (i32, i32) {
    %c0_i32 = arith.constant 0 : i32
    %c0_i32_0 = arith.constant 0 : i32
    %c0_i32_1 = arith.constant 0 : i32
    return %c0_i32, %c0_i32_0 : i32, i32
  }
  func.func @transform_5(%arg0: i32) -> (i32, i32) {
    %c0_i32 = arith.constant 0 : i32
    %c0_i32_0 = arith.constant 0 : i32
    %c0_i32_1 = arith.constant 0 : i32
    return %c0_i32, %c0_i32_0 : i32, i32
  }
  func.func @transform_6(%arg0: i32) -> (i32, i32) {
    %c0_i32 = arith.constant 0 : i32
    %c0_i32_0 = arith.constant 0 : i32
    return %arg0, %c0_i32 : i32, i32
  }
}

module attributes {stable_mosaic.version = 11 : i64} {
  func.func @attention_kernel(%arg0: i32, %arg1: memref<2x8xi32, #tpu.memory_space<vmem>>, %arg2: memref<2x1xi32, #tpu.memory_space<vmem>>, %arg3: memref<1x128xf32, #tpu.memory_space<vmem>>, %arg4: memref<128x32xf32, #tpu.memory_space<vmem>>, %arg5: memref<32x128xf32, #tpu.memory_space<vmem>>, %arg6: memref<1x128xf32, #tpu.memory_space<vmem>>, %arg7: memref<2x128xf32, #tpu.memory_space<vmem>>) attributes {dimension_semantics = [#tpu.dimension_semantics<parallel>], iteration_bounds = array<i64: 1>, scalar_prefetch = 0 : i64, scratch_operands = 0 : i64, tpu.core_type = #tpu.core_type<tc>, window_params = [{transform_indices = @transform_0, window_bounds = array<i64: 2, 8>}, {transform_indices = @transform_1, window_bounds = array<i64: 2, 1>}, {pipeline_mode = #tpu.pipeline_mode<synchronous>, transform_indices = @transform_2, window_bounds = array<i64: 1, 128>}, {pipeline_mode = #tpu.pipeline_mode<synchronous>, transform_indices = @transform_3, window_bounds = array<i64: 128, 32>}, {pipeline_mode = #tpu.pipeline_mode<synchronous>, transform_indices = @transform_4, window_bounds = array<i64: 32, 128>}, {pipeline_mode = #tpu.pipeline_mode<synchronous>, transform_indices = @transform_5, window_bounds = array<i64: 1, 128>}, {transform_indices = @transform_6, window_bounds = array<i64: 2, 128>}]} {
    %c0 = arith.constant 0 : index
    %c0_0 = arith.constant 0 : index
    %0 = vector.load %arg1[%c0, %c0_0] : memref<2x8xi32, #tpu.memory_space<vmem>>, vector<2x8xi32>
    %c0_1 = arith.constant 0 : index
    %c0_2 = arith.constant 0 : index
    %1 = vector.load %arg2[%c0_1, %c0_2] : memref<2x1xi32, #tpu.memory_space<vmem>>, vector<2x1xi32>
    %c0_3 = arith.constant 0 : index
    %c0_4 = arith.constant 0 : index
    %2 = vector.load %arg3[%c0_3, %c0_4] : memref<1x128xf32, #tpu.memory_space<vmem>>, vector<1x128xf32>
    %3 = tpu.iota {dimensions = array<i32: 1>} : vector<1x128xi32>
    %cst = arith.constant 0.000000e+00 : f32
    %4 = vector.broadcast %cst : f32 to vector<2x128xf32>
    %5 = vector.extract_strided_slice %0 {offsets = [0, 0], sizes = [2, 1], strides = [1, 1]} : vector<2x8xi32> to vector<2x1xi32>
    %6 = vector.broadcast %3 : vector<1x128xi32> to vector<2x128xi32>
    %7 = vector.broadcast %5 : vector<2x1xi32> to vector<2x128xi32>
    %8 = arith.cmpi eq, %6, %7 : vector<2x128xi32>
    %c0_i32 = arith.constant 0 : i32
    %9 = vector.broadcast %c0_i32 : i32 to vector<2x1xi32>
    %10 = arith.cmpi sgt, %1, %9 : vector<2x1xi32>
    %11 = vector.broadcast %10 : vector<2x1xi1> to vector<2x128xi1>
    %12 = arith.andi %8, %11 : vector<2x128xi1>
    %13 = arith.extui %12 : vector<2x128xi1> to vector<2x128xi32>
    %14 = arith.sitofp %13 : vector<2x128xi32> to vector<2x128xf32>
    %15 = arith.addf %4, %14 : vector<2x128xf32>
    %16 = vector.extract_strided_slice %0 {offsets = [0, 1], sizes = [2, 1], strides = [1, 1]} : vector<2x8xi32> to vector<2x1xi32>
    %17 = vector.broadcast %3 : vector<1x128xi32> to vector<2x128xi32>
    %18 = vector.broadcast %16 : vector<2x1xi32> to vector<2x128xi32>
    %19 = arith.cmpi eq, %17, %18 : vector<2x128xi32>
    %c1_i32 = arith.constant 1 : i32
    %20 = vector.broadcast %c1_i32 : i32 to vector<2x1xi32>
    %21 = arith.cmpi sgt, %1, %20 : vector<2x1xi32>
    %22 = vector.broadcast %21 : vector<2x1xi1> to vector<2x128xi1>
    %23 = arith.andi %19, %22 : vector<2x128xi1>
    %24 = arith.extui %23 : vector<2x128xi1> to vector<2x128xi32>
    %25 = arith.sitofp %24 : vector<2x128xi32> to vector<2x128xf32>
    %26 = arith.addf %15, %25 : vector<2x128xf32>
    %27 = vector.extract_strided_slice %0 {offsets = [0, 2], sizes = [2, 1], strides = [1, 1]} : vector<2x8xi32> to vector<2x1xi32>
    %28 = vector.broadcast %3 : vector<1x128xi32> to vector<2x128xi32>
    %29 = vector.broadcast %27 : vector<2x1xi32> to vector<2x128xi32>
    %30 = arith.cmpi eq, %28, %29 : vector<2x128xi32>
    %c2_i32 = arith.constant 2 : i32
    %31 = vector.broadcast %c2_i32 : i32 to vector<2x1xi32>
    %32 = arith.cmpi sgt, %1, %31 : vector<2x1xi32>
    %33 = vector.broadcast %32 : vector<2x1xi1> to vector<2x128xi1>
    %34 = arith.andi %30, %33 : vector<2x128xi1>
    %35 = arith.extui %34 : vector<2x128xi1> to vector<2x128xi32>
    %36 = arith.sitofp %35 : vector<2x128xi32> to vector<2x128xf32>
    %37 = arith.addf %26, %36 : vector<2x128xf32>
    %38 = vector.extract_strided_slice %0 {offsets = [0, 3], sizes = [2, 1], strides = [1, 1]} : vector<2x8xi32> to vector<2x1xi32>
    %39 = vector.broadcast %3 : vector<1x128xi32> to vector<2x128xi32>
    %40 = vector.broadcast %38 : vector<2x1xi32> to vector<2x128xi32>
    %41 = arith.cmpi eq, %39, %40 : vector<2x128xi32>
    %c3_i32 = arith.constant 3 : i32
    %42 = vector.broadcast %c3_i32 : i32 to vector<2x1xi32>
    %43 = arith.cmpi sgt, %1, %42 : vector<2x1xi32>
    %44 = vector.broadcast %43 : vector<2x1xi1> to vector<2x128xi1>
    %45 = arith.andi %41, %44 : vector<2x128xi1>
    %46 = arith.extui %45 : vector<2x128xi1> to vector<2x128xi32>
    %47 = arith.sitofp %46 : vector<2x128xi32> to vector<2x128xf32>
    %48 = arith.addf %37, %47 : vector<2x128xf32>
    %49 = vector.extract_strided_slice %0 {offsets = [0, 4], sizes = [2, 1], strides = [1, 1]} : vector<2x8xi32> to vector<2x1xi32>
    %50 = vector.broadcast %3 : vector<1x128xi32> to vector<2x128xi32>
    %51 = vector.broadcast %49 : vector<2x1xi32> to vector<2x128xi32>
    %52 = arith.cmpi eq, %50, %51 : vector<2x128xi32>
    %c4_i32 = arith.constant 4 : i32
    %53 = vector.broadcast %c4_i32 : i32 to vector<2x1xi32>
    %54 = arith.cmpi sgt, %1, %53 : vector<2x1xi32>
    %55 = vector.broadcast %54 : vector<2x1xi1> to vector<2x128xi1>
    %56 = arith.andi %52, %55 : vector<2x128xi1>
    %57 = arith.extui %56 : vector<2x128xi1> to vector<2x128xi32>
    %58 = arith.sitofp %57 : vector<2x128xi32> to vector<2x128xf32>
    %59 = arith.addf %48, %58 : vector<2x128xf32>
    %60 = vector.extract_strided_slice %0 {offsets = [0, 5], sizes = [2, 1], strides = [1, 1]} : vector<2x8xi32> to vector<2x1xi32>
    %61 = vector.broadcast %3 : vector<1x128xi32> to vector<2x128xi32>
    %62 = vector.broadcast %60 : vector<2x1xi32> to vector<2x128xi32>
    %63 = arith.cmpi eq, %61, %62 : vector<2x128xi32>
    %c5_i32 = arith.constant 5 : i32
    %64 = vector.broadcast %c5_i32 : i32 to vector<2x1xi32>
    %65 = arith.cmpi sgt, %1, %64 : vector<2x1xi32>
    %66 = vector.broadcast %65 : vector<2x1xi1> to vector<2x128xi1>
    %67 = arith.andi %63, %66 : vector<2x128xi1>
    %68 = arith.extui %67 : vector<2x128xi1> to vector<2x128xi32>
    %69 = arith.sitofp %68 : vector<2x128xi32> to vector<2x128xf32>
    %70 = arith.addf %59, %69 : vector<2x128xf32>
    %71 = vector.extract_strided_slice %0 {offsets = [0, 6], sizes = [2, 1], strides = [1, 1]} : vector<2x8xi32> to vector<2x1xi32>
    %72 = vector.broadcast %3 : vector<1x128xi32> to vector<2x128xi32>
    %73 = vector.broadcast %71 : vector<2x1xi32> to vector<2x128xi32>
    %74 = arith.cmpi eq, %72, %73 : vector<2x128xi32>
    %c6_i32 = arith.constant 6 : i32
    %75 = vector.broadcast %c6_i32 : i32 to vector<2x1xi32>
    %76 = arith.cmpi sgt, %1, %75 : vector<2x1xi32>
    %77 = vector.broadcast %76 : vector<2x1xi1> to vector<2x128xi1>
    %78 = arith.andi %74, %77 : vector<2x128xi1>
    %79 = arith.extui %78 : vector<2x128xi1> to vector<2x128xi32>
    %80 = arith.sitofp %79 : vector<2x128xi32> to vector<2x128xf32>
    %81 = arith.addf %70, %80 : vector<2x128xf32>
    %82 = vector.extract_strided_slice %0 {offsets = [0, 7], sizes = [2, 1], strides = [1, 1]} : vector<2x8xi32> to vector<2x1xi32>
    %83 = vector.broadcast %3 : vector<1x128xi32> to vector<2x128xi32>
    %84 = vector.broadcast %82 : vector<2x1xi32> to vector<2x128xi32>
    %85 = arith.cmpi eq, %83, %84 : vector<2x128xi32>
    %c7_i32 = arith.constant 7 : i32
    %86 = vector.broadcast %c7_i32 : i32 to vector<2x1xi32>
    %87 = arith.cmpi sgt, %1, %86 : vector<2x1xi32>
    %88 = vector.broadcast %87 : vector<2x1xi1> to vector<2x128xi1>
    %89 = arith.andi %85, %88 : vector<2x128xi1>
    %90 = arith.extui %89 : vector<2x128xi1> to vector<2x128xi32>
    %91 = arith.sitofp %90 : vector<2x128xi32> to vector<2x128xf32>
    %92 = arith.addf %81, %91 : vector<2x128xf32>
    %cst_5 = arith.constant 0.000000e+00 : f32
    %93 = vector.broadcast %cst_5 : f32 to vector<2x128xf32>
    %94 = arith.cmpf ogt, %92, %93 : vector<2x128xf32>
    %cst_6 = arith.constant 0xFF800000 : f32
    %95 = vector.shape_cast %2 : vector<1x128xf32> to vector<1x128xf32>
    %96 = vector.broadcast %95 : vector<1x128xf32> to vector<2x128xf32>
    %97 = vector.broadcast %cst_6 : f32 to vector<2x128xf32>
    %98 = arith.select %94, %96, %97 : vector<2x128xi1>, vector<2x128xf32>
    %cst_7 = arith.constant dense<0xFF800000> : vector<2xf32>
    %99 = vector.multi_reduction <maximumf>, %98, %cst_7 [1] : vector<2x128xf32> to vector<2xf32>
    %100 = vector.shape_cast %99 : vector<2xf32> to vector<2x1xf32>
    %101 = vector.broadcast %2 : vector<1x128xf32> to vector<2x128xf32>
    %102 = vector.broadcast %100 : vector<2x1xf32> to vector<2x128xf32>
    %103 = arith.subf %101, %102 : vector<2x128xf32>
    %104 = math.exp %103 : vector<2x128xf32>
    %105 = arith.mulf %92, %104 : vector<2x128xf32>
    %cst_8 = arith.constant 0.000000e+00 : f32
    %106 = vector.broadcast %cst_8 : f32 to vector<2x128xf32>
    %107 = arith.select %94, %105, %106 : vector<2x128xi1>, vector<2x128xf32>
    %cst_9 = arith.constant dense<0.000000e+00> : vector<2xf32>
    %108 = vector.multi_reduction <add>, %107, %cst_9 [1] : vector<2x128xf32> to vector<2xf32>
    %109 = vector.shape_cast %108 : vector<2xf32> to vector<2x1xf32>
    %cst_10 = arith.constant 1.000000e+00 : f32
    %110 = vector.broadcast %cst_10 : f32 to vector<2x1xf32>
    %111 = arith.divf %110, %109 : vector<2x1xf32>
    %112 = vector.broadcast %111 : vector<2x1xf32> to vector<2x128xf32>
    %113 = arith.mulf %107, %112 : vector<2x128xf32>
    %c0_11 = arith.constant 0 : index
    %c0_12 = arith.constant 0 : index
    %114 = vector.load %arg4[%c0_11, %c0_12] : memref<128x32xf32, #tpu.memory_space<vmem>>, vector<128x32xf32>
    %cst_13 = arith.constant dense<0.000000e+00> : vector<2x32xf32>
    %115 = tpu.matmul %113, %114, %cst_13 {dimension_numbers = #tpu.dot_dimension_numbers<[1], [0], [0], [1], [0, 0, 1, 1], [], []>} : vector<2x128xf32>, vector<128x32xf32>, vector<2x32xf32> -> vector<2x32xf32>
    %c0_14 = arith.constant 0 : index
    %c0_15 = arith.constant 0 : index
    %116 = vector.load %arg5[%c0_14, %c0_15] : memref<32x128xf32, #tpu.memory_space<vmem>>, vector<32x128xf32>
    %cst_16 = arith.constant dense<0.000000e+00> : vector<2x128xf32>
    %117 = tpu.matmul %115, %116, %cst_16 {dimension_numbers = #tpu.dot_dimension_numbers<[1], [0], [0], [1], [0, 0, 1, 1], [], []>} : vector<2x32xf32>, vector<32x128xf32>, vector<2x128xf32> -> vector<2x128xf32>
    %c0_17 = arith.constant 0 : index
    %c0_18 = arith.constant 0 : index
    %118 = vector.load %arg6[%c0_17, %c0_18] : memref<1x128xf32, #tpu.memory_space<vmem>>, vector<1x128xf32>
    %119 = vector.broadcast %118 : vector<1x128xf32> to vector<2x128xf32>
    %120 = arith.addf %117, %119 : vector<2x128xf32>
    %c0_19 = arith.constant 0 : index
    %c0_20 = arith.constant 0 : index
    %121 = vector.load %arg7[%c0_19, %c0_20] : memref<2x128xf32, #tpu.memory_space<vmem>>, vector<2x128xf32>
    tpu.vector_store %arg7[%c0_19, %c0_20], %120 {strides = array<i32>} : memref<2x128xf32, #tpu.memory_space<vmem>>, vector<2x128xf32>,
    return
  }
  func.func @transform_0(%arg0: i32) -> (i32, i32) {
    %c0_i32 = arith.constant 0 : i32
    %c0_i32_0 = arith.constant 0 : i32
    return %arg0, %c0_i32 : i32, i32
  }
  func.func @transform_1(%arg0: i32) -> (i32, i32) {
    %c0_i32 = arith.constant 0 : i32
    %c0_i32_0 = arith.constant 0 : i32
    return %arg0, %c0_i32 : i32, i32
  }
  func.func @transform_2(%arg0: i32) -> (i32, i32) {
    %c0_i32 = arith.constant 0 : i32
    %c0_i32_0 = arith.constant 0 : i32
    %c0_i32_1 = arith.constant 0 : i32
    return %c0_i32, %c0_i32_0 : i32, i32
  }
  func.func @transform_3(%arg0: i32) -> (i32, i32) {
    %c0_i32 = arith.constant 0 : i32
    %c0_i32_0 = arith.constant 0 : i32
    %c0_i32_1 = arith.constant 0 : i32
    return %c0_i32, %c0_i32_0 : i32, i32
  }
  func.func @transform_4(%arg0: i32) -> (i32, i32) {
    %c0_i32 = arith.constant 0 : i32
    %c0_i32_0 = arith.constant 0 : i32
    %c0_i32_1 = arith.constant 0 : i32
    return %c0_i32, %c0_i32_0 : i32, i32
  }
  func.func @transform_5(%arg0: i32) -> (i32, i32) {
    %c0_i32 = arith.constant 0 : i32
    %c0_i32_0 = arith.constant 0 : i32
    %c0_i32_1 = arith.constant 0 : i32
    return %c0_i32, %c0_i32_0 : i32, i32
  }
  func.func @transform_6(%arg0: i32) -> (i32, i32) {
    %c0_i32 = arith.constant 0 : i32
    %c0_i32_0 = arith.constant 0 : i32
    return %arg0, %c0_i32 : i32, i32
  }
}

</mosaic_0001>

<bundles_post_ra>
// kernel: tpu_custom_call.1
= control target key start
LH: loop header
LB: loop body
LE: loop exit
PB: predicated region body
PF: predicated region fallthrough
CT: control target
= control target key end

     0   :  { %v321_v1 = vmov 3   ;;  %v322_v2 = vmov 1   ;;  %v323_v4 = vmov 2   ;;  %s445_s0 = inlined_call_operand.vmem [shape: s32[2,8], index: 0, kind: input, shape index: {}]   ;;  %s446_s1 = inlined_call_operand.vmem [shape: s32[2,1], index: 1, kind: input, shape index: {}]   ;;  %s447_s2 = inlined_call_operand.vmem [shape: f32[1,128], index: 2, kind: input, shape index: {}]   ;;  %s448_s3 = inlined_call_operand.vmem [shape: f32[128,32], index: 3, kind: input, shape index: {}]   ;;  %s449_s4 = inlined_call_operand.vmem [shape: f32[32,128], index: 4, kind: input, shape index: {}]   ;;  %s450_s5 = inlined_call_operand.vmem [shape: f32[1,128], index: 5, kind: input, shape index: {}]   ;;  %s451_s6 = inlined_call_operand.hbm [shape: f32[2,128], index: 6, kind: output, shape index: {}]  }
   0x1   :  { %v24_v0 = vld [vmem:[%s445_s0] sm:$0x3]  ;;  %282 = vset.pattern.permute.xlu0 %v321_v1  ;;  %278 = vset.pattern.permute.xlu1 %v322_v2 }
   0x2   :  { %72 = vperm.xlu0 %282, %v24_v0   ;;  %44 = vperm.xlu1 %278, %v24_v0   ;;  %v25_v3 = vld [vmem:[%s446_s1] sm:$0x3] }
   0x3   :  { %280 = vset.pattern.permute.xlu2 %v323_v4 }
   0x4   :  { %11 = vsyncpa [#allocation3], 0  ;;  %58 = vperm.xlu2 %280, %v24_v0   ;;  %vm47_vm0 = vcmp.gt.s32.totalorder %v25_v3, 1  ;;  %vm61_vm1 = vcmp.gt.s32.totalorder %v25_v3, 2  ;;  %v324_v5 = vmov 0   ;;  %vm33_vm2 = vcmp.gt.s32.totalorder %v25_v3, 0 }
   0x5   :  { %v48_v6 = vsel %vm47_vm0, 1, %v324_v5  ;;  %v62_v7 = vsel %vm61_vm1, 1, %v324_v5  ;;  %vm75_vm3 = vcmp.gt.s32.totalorder %v25_v3, 3  ;;  %v34_v8 = vsel %vm33_vm2, 1, %v324_v5  ;;  %v289_v51 = vld [vmem:[%s447_s2] ss:$0 sm:$0xff] }
   0x6   :  { %v76_v9 = vsel %vm75_vm3, 1, %v324_v5  ;;  %vm103_vm4 = vcmp.gt.s32.totalorder %v25_v3, 5  ;;  %vm89_vm5 = vcmp.gt.s32.totalorder %v25_v3, 4  ;;  %v325_v10 = vmov 4   ;;  %v189_v55 = vld [vmem:[%s448_s3 + $0x78] sm:$0xff]  ;;  %v188_v56 = vld [vmem:[%s448_s3 + $0x70] sm:$0xff] }
   0x7   :  { %v104_v11 = vsel %vm103_vm4, 1, %v324_v5  ;;  %v90_v12 = vsel %vm89_vm5, 1, %v324_v5  ;;  %v326_v13 = vmov 5   ;;  %vm117_vm6 = vcmp.gt.s32.totalorder %v25_v3, 6  ;;  %190 = vmatpush.msra.mxu0 %v189_v55  ;;  %v187_v57 = vld [vmem:[%s448_s3 + $0x68] sm:$0xff]  ;;  %v186_v58 = vld [vmem:[%s448_s3 + $0x60] sm:$0xff] }
   0x8   :  { %v327_v14 = vmov 6   ;;  %v118_v15 = vsel %vm117_vm6, 1, %v324_v5  ;;  %vm131_vm7 = vcmp.gt.s32.totalorder %v25_v3, 7  ;;  %v328_v16 = vmov 7   ;;  %v185_v59 = vld [vmem:[%s448_s3 + $0x58] sm:$0xff]  ;;  %v184_v60 = vld [vmem:[%s448_s3 + $0x50] sm:$0xff] }
   0x9   :  { %v132_v17 = vsel %vm131_vm7, 1, %v324_v5  ;;  %v27_v25 = vlaneseq  ;;  %v329_v31 = vmov 0.0   ;;  %191 = vmatpush.msra.mxu0 %v188_v56  ;;  %v183_v4 = vld [vmem:[%s448_s3 + $0x48] sm:$0xff]  ;;  %s330_s14 = smov [#allocation2]   ;;  %s250_s18 = sshll.u32 %s451_s6, 4  ;;  %s251_s18 = int_to_ptr.hbm [resolvable:$true] %s250_s18 }
   0xa   :  { %283 = vset.pattern.permute.xlu0 %v324_v5  ;;  %279 = vset.pattern.permute.xlu1 %v324_v5  ;;  %s248_s15 = sshll.u32 %s330_s14, 4  ;;  %s249_s15 = int_to_ptr.vmem [resolvable:$true] %s248_s15 }
   0xb   :  { %30 = vperm.xlu0 %283, %v24_v0   ;;  %50 = vperm.xlu1 %279, %v48_v6   ;;  %v28_v28 = vand.u32 127, %v27_v25  ;;  %v181_v6 = vld [vmem:[%s448_s3 + $0x38] sm:$0xff] }
   0xc   :  { %281 = vset.pattern.permute.xlu2 %v324_v5  ;;  %192 = vmatpush.msra.mxu0 %v187_v57 }
   0xd   :  { %64 = vperm.xlu2 %281, %v62_v7   ;;  %v180_v7 = vld [vmem:[%s448_s3 + $0x30] sm:$0xff] }
   0xe   :  { %193 = vmatpush.msra.mxu0 %v186_v58 }
  0x10   :  { %194 = vmatpush.msra.mxu0 %v185_v59 }
  0x12   :  { %195 = vmatpush.msra.mxu0 %v184_v60 }
  0x13   :  { %36 = vperm.xlu0 %283, %v34_v8   ;;  %78 = vperm.xlu1 %279, %v76_v9   ;;  %v179_v8 = vld [vmem:[%s448_s3 + $0x28] sm:$0xff]  ;;  %v178_v9 = vld [vmem:[%s448_s3 + $0x20] sm:$0xff] }
  0x14   :  { %196 = vmatpush.msra.mxu0 %v183_v4 }
  0x15   :  { %284 = vset.pattern.permute.xlu2 %v325_v10  ;;  %v177_v10 = vld [vmem:[%s448_s3 + $0x18] sm:$0xff] }
  0x16   :  { %86 = vperm.xlu2 %284, %v24_v0  }
  0x1b   :  { %106 = vperm.xlu0 %283, %v104_v11   ;;  %92 = vperm.xlu1 %279, %v90_v12   ;;  %v176_v11 = vld [vmem:[%s448_s3 + $0x10] sm:$0xff]  ;;  %v175_v12 = vld [vmem:[%s448_s3 + $0x8] sm:$0xff] }
  0x1e   :  { %285 = vset.pattern.permute.xlu2 %v326_v13  ;;  %v174_v13 = vld [vmem:[%s448_s3] sm:$0xff] }
  0x1f   :  { %100 = vperm.xlu2 %285, %v24_v0  }
  0x23   :  { %286 = vset.pattern.permute.xlu1 %v327_v14  ;;  %v213_v14 = vld [vmem:[%s449_s4 + $0x18] sm:$0xff] }
  0x24   :  { %114 = vperm.xlu1 %286, %v24_v0   ;;  %234 = vmatpush.msra.mxu1 %v213_v14 }
  0x27   :  { %287 = vset.pattern.permute.xlu2 %v324_v5  ;;  %v182_v5 = vld [vmem:[%s448_s3 + $0x40] sm:$0xff] }
  0x28   :  { %120 = vperm.xlu2 %287, %v118_v15   ;;  %197 = vmatpush.msra.mxu0 %v182_v5  ;;  %v212_v15 = vld [vmem:[%s449_s4 + $0x10] sm:$0xff] }
  0x29   :  { %235 = vmatpush.msra.mxu1 %v212_v15 }
  0x2a   :  { %198 = vmatpush.msra.mxu0 %v181_v6 }
  0x2c   :  { %288 = vset.pattern.permute.xlu1 %v328_v16  ;;  %199 = vmatpush.msra.mxu0 %v180_v7  ;;  %v211_v16 = vld [vmem:[%s449_s4 + $0x8] sm:$0xff] }
  0x2d   :  { %128 = vperm.xlu1 %288, %v24_v0   ;;  %236 = vmatpush.msra.mxu1 %v211_v16 }
  0x2e   :  { %200 = vmatpush.msra.mxu0 %v179_v8 }
  0x30   :  { %134 = vperm.xlu2 %287, %v132_v17   ;;  %201 = vmatpush.msra.mxu0 %v178_v9 }
  0x32   :  { %202 = vmatpush.msra.mxu0 %v177_v10 }
  0x34   :  { %203 = vmatpush.msra.mxu0 %v176_v11 }
  0x36   :  { %204 = vmatpush.msra.mxu0 %v175_v12 }
  0x38   :  { %205 = vmatpush.msra.mxu0 %v174_v13 }
  0x5e   :  { %v59_v18 = vpop.permute.xlu2 %58 }
  0x5f   :  { %vm60_vm14 = vcmp.eq.s32.totalorder %v28_v28, %v59_v18 }
  0x67   :  { %v65_v21 = vpop.permute.xlu2 %64 }
  0x68   :  { %vm66_vm15 = vcmp.eq.s32.totalorder %v65_v21, 1 }
  0x69   :  { %vm67_vm0 = vmand %vm60_vm14, %vm66_vm15 }
  0x6a   :  { %v261_v36 = vsel %vm67_vm0, 1.0, %v329_v31  ;;  %vm146_vm0 = vcmask 1041408  }
  0x70   :  { %v87_v24 = vpop.permute.xlu2 %86 }
  0x71   :  { %vm88_vm4 = vcmp.eq.s32.totalorder %v28_v28, %v87_v24 }
  0x74   :  { %v45_v19 = vpop.permute.xlu1 %44  ;;  %v73_v20 = vpop.permute.xlu0 %72 }
  0x75   :  { %vm46_vm12 = vcmp.eq.s32.totalorder %v28_v28, %v45_v19  ;;  %vm74_vm3 = vcmp.eq.s32.totalorder %v28_v28, %v73_v20 }
  0x79   :  { %v101_v29 = vpop.permute.xlu2 %100 }
  0x7a   :  { %vm102_vm7 = vcmp.eq.s32.totalorder %v28_v28, %v101_v29  ;;  %v210_v29 = vld [vmem:[%s449_s4] sm:$0xff] }
  0x7b   :  { %237 = vmatpush.msra.mxu1 %v210_v29 }
  0x7d   :  { %v31_v22 = vpop.permute.xlu0 %30  ;;  %v51_v23 = vpop.permute.xlu1 %50 }
  0x7e   :  { %vm32_vm8 = vcmp.eq.s32.totalorder %v28_v28, %v31_v22  ;;  %vm52_vm10 = vcmp.eq.s32.totalorder %v51_v23, 1 }
  0x7f   :  { %vm53_vm13 = vmand %vm46_vm12, %vm52_vm10 }
  0x80   :  { %v260_v33 = vsel %vm53_vm13, 1.0, %v329_v31 }
  0x82   :  { %v121_v35 = vpop.permute.xlu2 %120 }
  0x85   :  { %v37_v26 = vpop.permute.xlu0 %36  ;;  %v79_v27 = vpop.permute.xlu1 %78 }
  0x86   :  { %vm38_vm9 = vcmp.eq.s32.totalorder %v37_v26, 1  ;;  %vm80_vm1 = vcmp.eq.s32.totalorder %v79_v27, 1 }
  0x87   :  { %vm39_vm11 = vmand %vm32_vm8, %vm38_vm9  ;;  %vm122_vm9 = vcmp.eq.s32.totalorder %v121_v35, 1 }
  0x88   :  { %v259_v32 = vsel %vm39_vm11, 1.0, %v329_v31  ;;  %vm81_vm5 = vmand %vm74_vm3, %vm80_vm1 }
  0x89   :  { %v56_v34 = vadd.f32 %v260_v33, %v259_v32  ;;  %v262_v40 = vsel %vm81_vm5, 1.0, %v329_v31 }
  0x8a   :  { %v135_v44 = vpop.permute.xlu2 %134 }
  0x8b   :  { %v70_v38 = vadd.f32 %v261_v36, %v56_v34  ;;  %vm136_vm13 = vcmp.eq.s32.totalorder %v135_v44, 1 }
  0x8d   :  { %v93_v30 = vpop.permute.xlu1 %92  ;;  %v107_v37 = vpop.permute.xlu0 %106  ;;  %v84_v42 = vadd.f32 %v262_v40, %v70_v38 }
  0x8e   :  { %vm94_vm2 = vcmp.eq.s32.totalorder %v93_v30, 1  ;;  %vm108_vm8 = vcmp.eq.s32.totalorder %v107_v37, 1 }
  0x8f   :  { %vm95_vm6 = vmand %vm88_vm4, %vm94_vm2 }
  0x90   :  { %v263_v41 = vsel %vm95_vm6, 1.0, %v329_v31  ;;  %vm109_vm11 = vmand %vm102_vm7, %vm108_vm8  ;;  %vm218_vm6 = vcmask 261120  }
  0x91   :  { %v98_v43 = vadd.f32 %v263_v41, %v84_v42  ;;  %v264_v45 = vsel %vm109_vm11, 1.0, %v329_v31 }
  0x93   :  { %v112_v47 = vadd.f32 %v264_v45, %v98_v43 }
  0x96   :  { %v115_v39 = vpop.permute.xlu1 %114 }
  0x97   :  { %vm116_vm10 = vcmp.eq.s32.totalorder %v28_v28, %v115_v39 }
  0x98   :  { %vm123_vm12 = vmand %vm116_vm10, %vm122_vm9 }
  0x99   :  { %v265_v46 = vsel %vm123_vm12, 1.0, %v329_v31 }
  0x9a   :  { %v126_v49 = vadd.f32 %v265_v46, %v112_v47 }
  0x9f   :  { %v129_v48 = vpop.permute.xlu1 %128 }
  0xa0   :  { %vm130_vm14 = vcmp.eq.s32.totalorder %v28_v28, %v129_v48 }
  0xa1   :  { %vm137_vm15 = vmand %vm130_vm14, %vm136_vm13 }
  0xa2   :  { %v266_v50 = vsel %vm137_vm15, 1.0, %v329_v31  ;;  %v290_v31 = vld [vmem:[%s450_s5] ss:$0 sm:$0xff] }
  0xa3   :  { %v140_v52 = vadd.f32 %v266_v50, %v126_v49 }
  0xa5   :  { %vm141_vm1 = vcmp.gt.f32.partialorder %v140_v52, 0.0 }
  0xa6   :  { %v145_v53 = vsel %vm141_vm1, %v289_v51, -inf }
  0xa7   :  { %v147_v54 = vsel %vm146_vm0, %v145_v53, -inf }
  0xa8   :  { %148 = vmax.xlane.f32.xlu0 %v147_v54 }
 0x11b   :  { %v149_v61 = vpop.xlane.xlu0 %148 }
 0x11c   :  { %v150_v62 = vsub.f32 %v289_v51, %v149_v61 }
 0x11e   :  { %v151_v63 = vmul.f32 1.442695, %v150_v62 }
 0x120   :  { %291 = vpow2.f32 %v151_v63 }
 0x126   :  { %v292_v0 = vpop.eup %291 }
 0x127   :  { %v153_v1 = vmul.f32 %v292_v0, %v140_v52 }
 0x129   :  { %v154_v2 = vsel %vm141_vm1, %v153_v1, 0.0 }
 0x12a   :  { %v155_v3 = vsel %vm146_vm0, %v154_v2, 0.0 }
 0x12b   :  { %156 = vadd.xlane.f32.xlu1 %v155_v3 }
 0x19e   :  { %v157_v17 = vpop.xlane.xlu1 %156 }
 0x19f   :  { %293 = vrcp.f32 %v157_v17  ;;  %v169_v21 = vand.u32 2147483648, %v157_v17  ;;  %v167_v23 = vand.u32 2147483647, %v157_v17  ;;  %vm163_vm3 = vweird.f32 %v157_v17 }
 0x1a1   :  { %v170_v25 = vor.u32 1.1754944e-38, %v169_v21  ;;  %vm168_vm5 = vcmp.eq.f32.partialorder %v167_v23, 8.507059e+37 }
 0x1a5   :  { %v294_v18 = vpop.eup %293 }
 0x1a6   :  { %v159_v19 = vmul.f32 %v294_v18, %v157_v17  ;;  %vm164_vm2 = vweird.f32 %v294_v18 }
 0x1a7   :  { %vm165_vm4 = vmor %vm163_vm3, %vm164_vm2 }
 0x1a8   :  { %v160_v20 = vsub.f32 1.0, %v159_v19 }
 0x1aa   :  { %v161_v22 = vmul.f32 %v294_v18, %v160_v20 }
 0x1ac   :  { %v162_v24 = vadd.f32 %v294_v18, %v161_v22 }
 0x1ae   :  { %v166_v26 = vsel %vm165_vm4, %v294_v18, %v162_v24 }
 0x1af   :  { %v171_v27 = vsel %vm168_vm5, %v170_v25, %v166_v26 }
 0x1b0   :  { %v173_v28 = vmul.f32 %v171_v27, %v154_v2 }
 0x1b2   :  { %206 = vmatmul.f32.vlgmr.msra.gmra.mxu0 %v173_v28 }
 0x22f   :  { %v207_v30 = vpop.f32.mrf.mxu0 }
 0x230   :  { %267 = vmatmul.msk.f32.vlgmr.msra.gmra.mxu1 %vm218_vm6, %v207_v30 }
 0x2ad   :  { %v239_v32 = vpop.f32.mrf.mxu1 }
 0x2ae   :  { %v240_v33 = vadd.f32 %v290_v31, %v239_v32 }
 0x2b0   :  { %242 = vst [vmem:[#allocation2] sm:$0x3] %v240_v33 }
 0x2b1   :  { %253 = dma.vmem_to_hbm [thread:$0]  %s249_s15, 32, %s251_s18, [#allocation3]  }
 0x2b2   :  { %319 = dma.done.wait [#allocation3], 32  }
 0x2b3   :  { %320 = vsyncadd [#allocation3], 4294967264 }
 0x2b4   :  { %258 = vsyncpa [#allocation3], 1 }

// kernel: tpu_custom_call.1
= control target key start
LH: loop header
LB: loop body
LE: loop exit
PB: predicated region body
PF: predicated region fallthrough
CT: control target
= control target key end

     0   :  { %v321_v1 = vmov 3   ;;  %v322_v2 = vmov 1   ;;  %v323_v4 = vmov 2   ;;  %s445_s0 = inlined_call_operand.vmem [shape: s32[2,8], index: 0, kind: input, shape index: {}]   ;;  %s446_s1 = inlined_call_operand.vmem [shape: s32[2,1], index: 1, kind: input, shape index: {}]   ;;  %s447_s2 = inlined_call_operand.vmem [shape: f32[1,128], index: 2, kind: input, shape index: {}]   ;;  %s448_s3 = inlined_call_operand.vmem [shape: f32[128,32], index: 3, kind: input, shape index: {}]   ;;  %s449_s4 = inlined_call_operand.vmem [shape: f32[32,128], index: 4, kind: input, shape index: {}]   ;;  %s450_s5 = inlined_call_operand.vmem [shape: f32[1,128], index: 5, kind: input, shape index: {}]   ;;  %s451_s6 = inlined_call_operand.hbm [shape: f32[2,128], index: 6, kind: output, shape index: {}]  }
   0x1   :  { %v24_v0 = vld [vmem:[%s445_s0] sm:$0x3]  ;;  %282 = vset.pattern.permute.xlu0 %v321_v1  ;;  %278 = vset.pattern.permute.xlu1 %v322_v2 }
   0x2   :  { %72 = vperm.xlu0 %282, %v24_v0   ;;  %44 = vperm.xlu1 %278, %v24_v0   ;;  %v25_v3 = vld [vmem:[%s446_s1] sm:$0x3] }
   0x3   :  { %280 = vset.pattern.permute.xlu2 %v323_v4 }
   0x4   :  { %11 = vsyncpa [#allocation3], 0  ;;  %58 = vperm.xlu2 %280, %v24_v0   ;;  %vm47_vm0 = vcmp.gt.s32.totalorder %v25_v3, 1  ;;  %vm61_vm1 = vcmp.gt.s32.totalorder %v25_v3, 2  ;;  %v324_v5 = vmov 0   ;;  %vm33_vm2 = vcmp.gt.s32.totalorder %v25_v3, 0 }
   0x5   :  { %v48_v6 = vsel %vm47_vm0, 1, %v324_v5  ;;  %v62_v7 = vsel %vm61_vm1, 1, %v324_v5  ;;  %vm75_vm3 = vcmp.gt.s32.totalorder %v25_v3, 3  ;;  %v34_v8 = vsel %vm33_vm2, 1, %v324_v5  ;;  %v289_v51 = vld [vmem:[%s447_s2] ss:$0 sm:$0xff] }
   0x6   :  { %v76_v9 = vsel %vm75_vm3, 1, %v324_v5  ;;  %vm103_vm4 = vcmp.gt.s32.totalorder %v25_v3, 5  ;;  %vm89_vm5 = vcmp.gt.s32.totalorder %v25_v3, 4  ;;  %v325_v10 = vmov 4   ;;  %v189_v55 = vld [vmem:[%s448_s3 + $0x78] sm:$0xff]  ;;  %v188_v56 = vld [vmem:[%s448_s3 + $0x70] sm:$0xff] }
   0x7   :  { %v104_v11 = vsel %vm103_vm4, 1, %v324_v5  ;;  %v90_v12 = vsel %vm89_vm5, 1, %v324_v5  ;;  %v326_v13 = vmov 5   ;;  %vm117_vm6 = vcmp.gt.s32.totalorder %v25_v3, 6  ;;  %190 = vmatpush.msra.mxu0 %v189_v55  ;;  %v187_v57 = vld [vmem:[%s448_s3 + $0x68] sm:$0xff]  ;;  %v186_v58 = vld [vmem:[%s448_s3 + $0x60] sm:$0xff] }
   0x8   :  { %v327_v14 = vmov 6   ;;  %v118_v15 = vsel %vm117_vm6, 1, %v324_v5  ;;  %vm131_vm7 = vcmp.gt.s32.totalorder %v25_v3, 7  ;;  %v328_v16 = vmov 7   ;;  %v185_v59 = vld [vmem:[%s448_s3 + $0x58] sm:$0xff]  ;;  %v184_v60 = vld [vmem:[%s448_s3 + $0x50] sm:$0xff] }
   0x9   :  { %v132_v17 = vsel %vm131_vm7, 1, %v324_v5  ;;  %v27_v25 = vlaneseq  ;;  %v329_v31 = vmov 0.0   ;;  %191 = vmatpush.msra.mxu0 %v188_v56  ;;  %v183_v4 = vld [vmem:[%s448_s3 + $0x48] sm:$0xff]  ;;  %s330_s14 = smov [#allocation2]   ;;  %s250_s18 = sshll.u32 %s451_s6, 4  ;;  %s251_s18 = int_to_ptr.hbm [resolvable:$true] %s250_s18 }
   0xa   :  { %283 = vset.pattern.permute.xlu0 %v324_v5  ;;  %279 = vset.pattern.permute.xlu1 %v324_v5  ;;  %s248_s15 = sshll.u32 %s330_s14, 4  ;;  %s249_s15 = int_to_ptr.vmem [resolvable:$true] %s248_s15 }
   0xb   :  { %30 = vperm.xlu0 %283, %v24_v0   ;;  %50 = vperm.xlu1 %279, %v48_v6   ;;  %v28_v28 = vand.u32 127, %v27_v25  ;;  %v181_v6 = vld [vmem:[%s448_s3 + $0x38] sm:$0xff] }
   0xc   :  { %281 = vset.pattern.permute.xlu2 %v324_v5  ;;  %192 = vmatpush.msra.mxu0 %v187_v57 }
   0xd   :  { %64 = vperm.xlu2 %281, %v62_v7   ;;  %v180_v7 = vld [vmem:[%s448_s3 + $0x30] sm:$0xff] }
   0xe   :  { %193 = vmatpush.msra.mxu0 %v186_v58 }
  0x10   :  { %194 = vmatpush.msra.mxu0 %v185_v59 }
  0x12   :  { %195 = vmatpush.msra.mxu0 %v184_v60 }
  0x13   :  { %36 = vperm.xlu0 %283, %v34_v8   ;;  %78 = vperm.xlu1 %279, %v76_v9   ;;  %v179_v8 = vld [vmem:[%s448_s3 + $0x28] sm:$0xff]  ;;  %v178_v9 = vld [vmem:[%s448_s3 + $0x20] sm:$0xff] }
  0x14   :  { %196 = vmatpush.msra.mxu0 %v183_v4 }
  0x15   :  { %284 = vset.pattern.permute.xlu2 %v325_v10  ;;  %v177_v10 = vld [vmem:[%s448_s3 + $0x18] sm:$0xff] }
  0x16   :  { %86 = vperm.xlu2 %284, %v24_v0  }
  0x1b   :  { %106 = vperm.xlu0 %283, %v104_v11   ;;  %92 = vperm.xlu1 %279, %v90_v12   ;;  %v176_v11 = vld [vmem:[%s448_s3 + $0x10] sm:$0xff]  ;;  %v175_v12 = vld [vmem:[%s448_s3 + $0x8] sm:$0xff] }
  0x1e   :  { %285 = vset.pattern.permute.xlu2 %v326_v13  ;;  %v174_v13 = vld [vmem:[%s448_s3] sm:$0xff] }
  0x1f   :  { %100 = vperm.xlu2 %285, %v24_v0  }
  0x23   :  { %286 = vset.pattern.permute.xlu1 %v327_v14  ;;  %v213_v14 = vld [vmem:[%s449_s4 + $0x18] sm:$0xff] }
  0x24   :  { %114 = vperm.xlu1 %286, %v24_v0   ;;  %234 = vmatpush.msra.mxu1 %v213_v14 }
  0x27   :  { %287 = vset.pattern.permute.xlu2 %v324_v5  ;;  %v182_v5 = vld [vmem:[%s448_s3 + $0x40] sm:$0xff] }
  0x28   :  { %120 = vperm.xlu2 %287, %v118_v15   ;;  %197 = vmatpush.msra.mxu0 %v182_v5  ;;  %v212_v15 = vld [vmem:[%s449_s4 + $0x10] sm:$0xff] }
  0x29   :  { %235 = vmatpush.msra.mxu1 %v212_v15 }
  0x2a   :  { %198 = vmatpush.msra.mxu0 %v181_v6 }
  0x2c   :  { %288 = vset.pattern.permute.xlu1 %v328_v16  ;;  %199 = vmatpush.msra.mxu0 %v180_v7  ;;  %v211_v16 = vld [vmem:[%s449_s4 + $0x8] sm:$0xff] }
  0x2d   :  { %128 = vperm.xlu1 %288, %v24_v0   ;;  %236 = vmatpush.msra.mxu1 %v211_v16 }
  0x2e   :  { %200 = vmatpush.msra.mxu0 %v179_v8 }
  0x30   :  { %134 = vperm.xlu2 %287, %v132_v17   ;;  %201 = vmatpush.msra.mxu0 %v178_v9 }
  0x32   :  { %202 = vmatpush.msra.mxu0 %v177_v10 }
  0x34   :  { %203 = vmatpush.msra.mxu0 %v176_v11 }
  0x36   :  { %204 = vmatpush.msra.mxu0 %v175_v12 }
  0x38   :  { %205 = vmatpush.msra.mxu0 %v174_v13 }
  0x5e   :  { %v59_v18 = vpop.permute.xlu2 %58 }
  0x5f   :  { %vm60_vm14 = vcmp.eq.s32.totalorder %v28_v28, %v59_v18 }
  0x67   :  { %v65_v21 = vpop.permute.xlu2 %64 }
  0x68   :  { %vm66_vm15 = vcmp.eq.s32.totalorder %v65_v21, 1 }
  0x69   :  { %vm67_vm0 = vmand %vm60_vm14, %vm66_vm15 }
  0x6a   :  { %v261_v36 = vsel %vm67_vm0, 1.0, %v329_v31  ;;  %vm146_vm0 = vcmask 1041408  }
  0x70   :  { %v87_v24 = vpop.permute.xlu2 %86 }
  0x71   :  { %vm88_vm4 = vcmp.eq.s32.totalorder %v28_v28, %v87_v24 }
  0x74   :  { %v45_v19 = vpop.permute.xlu1 %44  ;;  %v73_v20 = vpop.permute.xlu0 %72 }
  0x75   :  { %vm46_vm12 = vcmp.eq.s32.totalorder %v28_v28, %v45_v19  ;;  %vm74_vm3 = vcmp.eq.s32.totalorder %v28_v28, %v73_v20 }
  0x79   :  { %v101_v29 = vpop.permute.xlu2 %100 }
  0x7a   :  { %vm102_vm7 = vcmp.eq.s32.totalorder %v28_v28, %v101_v29  ;;  %v210_v29 = vld [vmem:[%s449_s4] sm:$0xff] }
  0x7b   :  { %237 = vmatpush.msra.mxu1 %v210_v29 }
  0x7d   :  { %v31_v22 = vpop.permute.xlu0 %30  ;;  %v51_v23 = vpop.permute.xlu1 %50 }
  0x7e   :  { %vm32_vm8 = vcmp.eq.s32.totalorder %v28_v28, %v31_v22  ;;  %vm52_vm10 = vcmp.eq.s32.totalorder %v51_v23, 1 }
  0x7f   :  { %vm53_vm13 = vmand %vm46_vm12, %vm52_vm10 }
  0x80   :  { %v260_v33 = vsel %vm53_vm13, 1.0, %v329_v31 }
  0x82   :  { %v121_v35 = vpop.permute.xlu2 %120 }
  0x85   :  { %v37_v26 = vpop.permute.xlu0 %36  ;;  %v79_v27 = vpop.permute.xlu1 %78 }
  0x86   :  { %vm38_vm9 = vcmp.eq.s32.totalorder %v37_v26, 1  ;;  %vm80_vm1 = vcmp.eq.s32.totalorder %v79_v27, 1 }
  0x87   :  { %vm39_vm11 = vmand %vm32_vm8, %vm38_vm9  ;;  %vm122_vm9 = vcmp.eq.s32.totalorder %v121_v35, 1 }
  0x88   :  { %v259_v32 = vsel %vm39_vm11, 1.0, %v329_v31  ;;  %vm81_vm5 = vmand %vm74_vm3, %vm80_vm1 }
  0x89   :  { %v56_v34 = vadd.f32 %v260_v33, %v259_v32  ;;  %v262_v40 = vsel %vm81_vm5, 1.0, %v329_v31 }
  0x8a   :  { %v135_v44 = vpop.permute.xlu2 %134 }
  0x8b   :  { %v70_v38 = vadd.f32 %v261_v36, %v56_v34  ;;  %vm136_vm13 = vcmp.eq.s32.totalorder %v135_v44, 1 }
  0x8d   :  { %v93_v30 = vpop.permute.xlu1 %92  ;;  %v107_v37 = vpop.permute.xlu0 %106  ;;  %v84_v42 = vadd.f32 %v262_v40, %v70_v38 }
  0x8e   :  { %vm94_vm2 = vcmp.eq.s32.totalorder %v93_v30, 1  ;;  %vm108_vm8 = vcmp.eq.s32.totalorder %v107_v37, 1 }
  0x8f   :  { %vm95_vm6 = vmand %vm88_vm4, %vm94_vm2 }
  0x90   :  { %v263_v41 = vsel %vm95_vm6, 1.0, %v329_v31  ;;  %vm109_vm11 = vmand %vm102_vm7, %vm108_vm8  ;;  %vm218_vm6 = vcmask 261120  }
  0x91   :  { %v98_v43 = vadd.f32 %v263_v41, %v84_v42  ;;  %v264_v45 = vsel %vm109_vm11, 1.0, %v329_v31 }
  0x93   :  { %v112_v47 = vadd.f32 %v264_v45, %v98_v43 }
  0x96   :  { %v115_v39 = vpop.permute.xlu1 %114 }
  0x97   :  { %vm116_vm10 = vcmp.eq.s32.totalorder %v28_v28, %v115_v39 }
  0x98   :  { %vm123_vm12 = vmand %vm116_vm10, %vm122_vm9 }
  0x99   :  { %v265_v46 = vsel %vm123_vm12, 1.0, %v329_v31 }
  0x9a   :  { %v126_v49 = vadd.f32 %v265_v46, %v112_v47 }
  0x9f   :  { %v129_v48 = vpop.permute.xlu1 %128 }
  0xa0   :  { %vm130_vm14 = vcmp.eq.s32.totalorder %v28_v28, %v129_v48 }
  0xa1   :  { %vm137_vm15 = vmand %vm130_vm14, %vm136_vm13 }
  0xa2   :  { %v266_v50 = vsel %vm137_vm15, 1.0, %v329_v31  ;;  %v290_v31 = vld [vmem:[%s450_s5] ss:$0 sm:$0xff] }
  0xa3   :  { %v140_v52 = vadd.f32 %v266_v50, %v126_v49 }
  0xa5   :  { %vm141_vm1 = vcmp.gt.f32.partialorder %v140_v52, 0.0 }
  0xa6   :  { %v145_v53 = vsel %vm141_vm1, %v289_v51, -inf }
  0xa7   :  { %v147_v54 = vsel %vm146_vm0, %v145_v53, -inf }
  0xa8   :  { %148 = vmax.xlane.f32.xlu0 %v147_v54 }
 0x11b   :  { %v149_v61 = vpop.xlane.xlu0 %148 }
 0x11c   :  { %v150_v62 = vsub.f32 %v289_v51, %v149_v61 }
 0x11e   :  { %v151_v63 = vmul.f32 1.442695, %v150_v62 }
 0x120   :  { %291 = vpow2.f32 %v151_v63 }
 0x126   :  { %v292_v0 = vpop.eup %291 }
 0x127   :  { %v153_v1 = vmul.f32 %v292_v0, %v140_v52 }
 0x129   :  { %v154_v2 = vsel %vm141_vm1, %v153_v1, 0.0 }
 0x12a   :  { %v155_v3 = vsel %vm146_vm0, %v154_v2, 0.0 }
 0x12b   :  { %156 = vadd.xlane.f32.xlu1 %v155_v3 }
 0x19e   :  { %v157_v17 = vpop.xlane.xlu1 %156 }
 0x19f   :  { %293 = vrcp.f32 %v157_v17  ;;  %v169_v21 = vand.u32 2147483648, %v157_v17  ;;  %v167_v23 = vand.u32 2147483647, %v157_v17  ;;  %vm163_vm3 = vweird.f32 %v157_v17 }
 0x1a1   :  { %v170_v25 = vor.u32 1.1754944e-38, %v169_v21  ;;  %vm168_vm5 = vcmp.eq.f32.partialorder %v167_v23, 8.507059e+37 }
 0x1a5   :  { %v294_v18 = vpop.eup %293 }
 0x1a6   :  { %v159_v19 = vmul.f32 %v294_v18, %v157_v17  ;;  %vm164_vm2 = vweird.f32 %v294_v18 }
 0x1a7   :  { %vm165_vm4 = vmor %vm163_vm3, %vm164_vm2 }
 0x1a8   :  { %v160_v20 = vsub.f32 1.0, %v159_v19 }
 0x1aa   :  { %v161_v22 = vmul.f32 %v294_v18, %v160_v20 }
 0x1ac   :  { %v162_v24 = vadd.f32 %v294_v18, %v161_v22 }
 0x1ae   :  { %v166_v26 = vsel %vm165_vm4, %v294_v18, %v162_v24 }
 0x1af   :  { %v171_v27 = vsel %vm168_vm5, %v170_v25, %v166_v26 }
 0x1b0   :  { %v173_v28 = vmul.f32 %v171_v27, %v154_v2 }
 0x1b2   :  { %206 = vmatmul.f32.vlgmr.msra.gmra.mxu0 %v173_v28 }
 0x22f   :  { %v207_v30 = vpop.f32.mrf.mxu0 }
 0x230   :  { %267 = vmatmul.msk.f32.vlgmr.msra.gmra.mxu1 %vm218_vm6, %v207_v30 }
 0x2ad   :  { %v239_v32 = vpop.f32.mrf.mxu1 }
 0x2ae   :  { %v240_v33 = vadd.f32 %v290_v31, %v239_v32 }
 0x2b0   :  { %242 = vst [vmem:[#allocation2] sm:$0x3] %v240_v33 }
 0x2b1   :  { %253 = dma.vmem_to_hbm [thread:$0]  %s249_s15, 32, %s251_s18, [#allocation3]  }
 0x2b2   :  { %319 = dma.done.wait [#allocation3], 32  }
 0x2b3   :  { %320 = vsyncadd [#allocation3], 4294967264 }
 0x2b4   :  { %258 = vsyncpa [#allocation3], 1 }

</bundles_post_ra>
